<compile_context>
chip_gen: v6e
topology: v6e:2x2x1
jax: 0.10.0
libtpu: 0.0.40
codegen_flags: <defaults>
</compile_context>

<pallas_src>
import jax
import jax.numpy as jnp
from jax.experimental import pallas as pl
from jax.experimental.pallas import tpu as pltpu


def _whitening_kernel(vecs_ref, kernel_ref, bias_k_ref, out_ref):
    # (TN, Cp): whitening projection on the MXU, f32 accumulate,
    # bias already folded into bias_k = bias @ kernel.
    y = jnp.dot(vecs_ref[...], kernel_ref[...],
                preferred_element_type=jnp.float32) + bias_k_ref[...]
    # Row-wise L2 normalization (padded columns are exactly zero, so they do
    # not perturb the norm). rsqrt routes to the EUP slot.
    sq = jnp.sum(y * y, axis=-1, keepdims=True)
    inv_norm = jax.lax.rsqrt(sq)
    out_ref[...] = (y * inv_norm).astype(out_ref.dtype)


def bert_whitening_transform(vecs, kernel, bias, n_components,
                             tile_n=512, out_dtype=jnp.float32):
    """L2_normalize_rows((vecs + bias) @ kernel[:, :n_components])."""
    # ---- glue (plain JAX, one-time) -------------------------------------
    kernel = kernel[:, :n_components].astype(vecs.dtype)           # (H, C)
    bias = bias.reshape(1, -1)
    # Fold bias into the projection: (v + b) @ K == v @ K + b @ K.
    bias_k = jnp.dot(bias.astype(jnp.float32),
                     kernel.astype(jnp.float32))                   # (1, C) f32

    N, H = vecs.shape
    C = kernel.shape[1]

    # Lane-dense output: pad component dim up to a multiple of 128 with zeros.
    C_pad = pl.cdiv(C, 128) * 128
    if C_pad != C:
        kernel = jnp.pad(kernel, ((0, 0), (0, C_pad - C)))
        bias_k = jnp.pad(bias_k, ((0, 0), (0, C_pad - C)))

    # Row tile: large by default, clamped to the (8-aligned) batch size.
    n_pad8 = ((N + 7) // 8) * 8
    tile_n = max(8, (min(tile_n, n_pad8) // 8) * 8)
    N_pad = pl.cdiv(N, tile_n) * tile_n
    if N_pad != N:
        vecs = jnp.pad(vecs, ((0, N_pad - N), (0, 0)))

    grid = (N_pad // tile_n,)

    # Explicit VMEM budget: double-buffered vecs/out tiles + resident kernel
    # and bias_k, plus headroom. Capped so it is valid on v7x's 64 MiB VMEM.
    in_bytes = jnp.dtype(vecs.dtype).itemsize
    out_bytes = jnp.dtype(out_dtype).itemsize
    vmem_bytes = (2 * tile_n * H * in_bytes          # vecs tiles (2 bufs)
                  + 2 * H * C_pad * in_bytes         # kernel (budget 2x)
                  + 2 * 1 * C_pad * 4                # bias_k
                  + 2 * tile_n * C_pad * out_bytes)  # out tiles (2 bufs)
    vmem_limit = min(60 << 20, int(vmem_bytes * 1.5) + (4 << 20))

    out_padded = pl.pallas_call(
        _whitening_kernel,
        out_shape=jax.ShapeDtypeStruct((N_pad, C_pad), out_dtype),
        grid_spec=pl.GridSpec(
            grid=grid,
            in_specs=[
                pl.BlockSpec((tile_n, H), lambda i: (i, 0)),   # vecs row-tile
                pl.BlockSpec((H, C_pad), lambda i: (0, 0)),    # kernel (resident)
                pl.BlockSpec((1, C_pad), lambda i: (0, 0)),    # bias_k (resident)
            ],
            out_specs=pl.BlockSpec((tile_n, C_pad), lambda i: (i, 0)),
        ),
        compiler_params=pltpu.CompilerParams(
            dimension_semantics=("parallel",),
            vmem_limit_bytes=vmem_limit),
    )(vecs, kernel, bias_k)

    # Slice off row / component padding (padded region may contain junk).
    return out_padded[:N, :C]


def _reference(vecs, kernel, bias, n_components):
    k = kernel[:, :n_components]
    y = (vecs + bias.reshape(1, -1)) @ k
    return y / jnp.sqrt(jnp.sum(y * y, axis=-1, keepdims=True))


if __name__ == "__main__":
    # Small synthetic shapes consistent with the module:
    #   N sentences, hidden size H (stand-in for BERT hidden), n_components C.
    N, H, C = 16, 32, 16

    key = jax.random.PRNGKey(0)
    k_vecs, k_kernel, k_bias = jax.random.split(key, 3)

    # Synthetic "BERT sentence embeddings" (stand-in for model output).
    vecs = jax.random.normal(k_vecs, (N, H), dtype=jnp.float32)
    # Deterministic whitening parameters (stand-in for kernel.npy / bias.npy).
    kernel = jax.random.normal(k_kernel, (H, H), dtype=jnp.float32) * 0.1
    bias = jax.random.normal(k_bias, (1, H), dtype=jnp.float32) * 0.1

    out = bert_whitening_transform(vecs, kernel, bias, n_components=C)
    out = jax.block_until_ready(out)

    ref = _reference(vecs, kernel, bias, C)
    assert out.shape == (N, C)
    assert jnp.allclose(out, ref, atol=1e-5, rtol=1e-5), "mismatch vs reference"

    print("KERNEL_OK")
</pallas_src>

<mosaic_0001>
module attributes {stable_mosaic.version = 11 : i64} {
  func.func @_whitening_kernel(%arg0: i32, %arg1: memref<16x32xf32, #tpu.memory_space<vmem>>, %arg2: memref<32x128xf32, #tpu.memory_space<vmem>>, %arg3: memref<1x128xf32, #tpu.memory_space<vmem>>, %arg4: memref<16x128xf32, #tpu.memory_space<vmem>>) attributes {dimension_semantics = [#tpu.dimension_semantics<parallel>], iteration_bounds = array<i64: 1>, scalar_prefetch = 0 : i64, scratch_operands = 0 : i64, tpu.core_type = #tpu.core_type<tc>, window_params = [{transform_indices = @transform_0, window_bounds = array<i64: 16, 32>}, {pipeline_mode = #tpu.pipeline_mode<synchronous>, transform_indices = @transform_1, window_bounds = array<i64: 32, 128>}, {pipeline_mode = #tpu.pipeline_mode<synchronous>, transform_indices = @transform_2, window_bounds = array<i64: 1, 128>}, {transform_indices = @transform_3, window_bounds = array<i64: 16, 128>}]} {
    %c0 = arith.constant 0 : index
    %c0_0 = arith.constant 0 : index
    %0 = vector.load %arg1[%c0, %c0_0] : memref<16x32xf32, #tpu.memory_space<vmem>>, vector<16x32xf32>
    %c0_1 = arith.constant 0 : index
    %c0_2 = arith.constant 0 : index
    %1 = vector.load %arg2[%c0_1, %c0_2] : memref<32x128xf32, #tpu.memory_space<vmem>>, vector<32x128xf32>
    %cst = arith.constant dense<0.000000e+00> : vector<16x128xf32>
    %2 = tpu.matmul %0, %1, %cst {dimension_numbers = #tpu.dot_dimension_numbers<[1], [0], [0], [1], [0, 0, 1, 1], [], []>} : vector<16x32xf32>, vector<32x128xf32>, vector<16x128xf32> -> vector<16x128xf32>
    %c0_3 = arith.constant 0 : index
    %c0_4 = arith.constant 0 : index
    %3 = vector.load %arg3[%c0_3, %c0_4] : memref<1x128xf32, #tpu.memory_space<vmem>>, vector<1x128xf32>
    %4 = vector.broadcast %3 : vector<1x128xf32> to vector<16x128xf32>
    %5 = arith.addf %2, %4 : vector<16x128xf32>
    %6 = arith.mulf %5, %5 : vector<16x128xf32>
    %cst_5 = arith.constant dense<0.000000e+00> : vector<16xf32>
    %7 = vector.multi_reduction <add>, %6, %cst_5 [1] : vector<16x128xf32> to vector<16xf32>
    %8 = vector.shape_cast %7 : vector<16xf32> to vector<16x1xf32>
    %9 = math.rsqrt %8 : vector<16x1xf32>
    %10 = vector.broadcast %9 : vector<16x1xf32> to vector<16x128xf32>
    %11 = arith.mulf %5, %10 : vector<16x128xf32>
    %c0_6 = arith.constant 0 : index
    %c0_7 = arith.constant 0 : index
    %12 = vector.load %arg4[%c0_6, %c0_7] : memref<16x128xf32, #tpu.memory_space<vmem>>, vector<16x128xf32>
    tpu.vector_store %arg4[%c0_6, %c0_7], %11 {strides = array<i32>} : memref<16x128xf32, #tpu.memory_space<vmem>>, vector<16x128xf32>,
    return
  }
  func.func @transform_0(%arg0: i32) -> (i32, i32) {
    %c0_i32 = arith.constant 0 : i32
    %c0_i32_0 = arith.constant 0 : i32
    return %arg0, %c0_i32 : i32, i32
  }
  func.func @transform_1(%arg0: i32) -> (i32, i32) {
    %c0_i32 = arith.constant 0 : i32
    %c0_i32_0 = arith.constant 0 : i32
    %c0_i32_1 = arith.constant 0 : i32
    return %c0_i32, %c0_i32_0 : i32, i32
  }
  func.func @transform_2(%arg0: i32) -> (i32, i32) {
    %c0_i32 = arith.constant 0 : i32
    %c0_i32_0 = arith.constant 0 : i32
    %c0_i32_1 = arith.constant 0 : i32
    return %c0_i32, %c0_i32_0 : i32, i32
  }
  func.func @transform_3(%arg0: i32) -> (i32, i32) {
    %c0_i32 = arith.constant 0 : i32
    %c0_i32_0 = arith.constant 0 : i32
    return %arg0, %c0_i32 : i32, i32
  }
}

</mosaic_0001>

<bundles_post_ra>
// kernel: tpu_custom_call.1
= control target key start
LH: loop header
LB: loop body
LE: loop exit
PB: predicated region body
PF: predicated region fallthrough
CT: control target
= control target key end

     0   :  { %8 = vsyncpa [#allocation3], 0  ;;  %s311_s0 = inlined_call_operand.hbm [shape: f32[16,32], index: 0, kind: input, shape index: {}]   ;;  %s312_s1 = inlined_call_operand.hbm [shape: f32[32,128], index: 1, kind: input, shape index: {}]   ;;  %s313_s2 = inlined_call_operand.vmem [shape: f32[1,128], index: 2, kind: input, shape index: {}]   ;;  %s314_s3 = inlined_call_operand.hbm [shape: f32[16,128], index: 3, kind: output, shape index: {}]  }
   0x1   :  { %9 = vsyncpa [#allocation6], 0 }
   0x2   :  { %10 = vsyncpa [#allocation4], 0  ;;  %s263_s12 = smov [#allocation2]  }
   0x3   :  { %s16_s13 = sshll.u32 %s263_s12, 4  ;;  %s17_s13 = int_to_ptr.vmem [resolvable:$true] %s16_s13 }
   0x4   :  { %s205_s14 = scalar_lea.vmem %s17_s13, 256  ;;  %p210_p1 = scmp.lt.s32.totalorder %s17_s13, %s17_s13 }
   0x5   :  { %p206_p0 = scmp.ne.s32.totalorder %s17_s13, %s205_s14  ;;  %p211_p2 = scmp.lt.s32.totalorder %s205_s14, %s205_s14 }
   0x7   :  { %p212_p3 = por %p211_p2, %p210_p1 }
   0x9   :  { %p213_p4 = pnand %p212_p3, %p206_p0 }
   0xb   :  { %216 = shalt.err (!%p213_p4)
}
   0xc   :  { %s264_s15 = smov 128   ;;  %s265_s16 = smov 8  }
   0xd   :  { %22 = dma.hbm_to_vmem [thread:$0]  %s311_s0, 256, %s17_s13, [#allocation3], %s264_s15, %s264_s15, %s265_s16  }
   0xe   :  { %s266_s19 = smov [#allocation5]  }
   0xf   :  { %s28_s20 = sshll.u32 %s266_s19, 4  ;;  %s29_s20 = int_to_ptr.vmem [resolvable:$true] %s28_s20 }
  0x10   :  { %s225_s21 = scalar_lea.vmem %s29_s20, 512  ;;  %p230_p6 = scmp.lt.s32.totalorder %s29_s20, %s29_s20 }
  0x11   :  { %p226_p5 = scmp.ne.s32.totalorder %s29_s20, %s225_s21  ;;  %p231_p7 = scmp.lt.s32.totalorder %s225_s21, %s225_s21 }
  0x13   :  { %p232_p8 = por %p231_p7, %p230_p6 }
  0x15   :  { %p233_p9 = pnand %p232_p8, %p226_p5 }
  0x17   :  { %236 = shalt.err (!%p233_p9)
}
  0x18   :  { %34 = dma.hbm_to_vmem [thread:$0]  %s312_s1, 512, %s29_s20, [#allocation6], %s264_s15, %s264_s15, %s265_s16  }
  0x19   :  { %257 = dma.done.wait [#allocation3], 256  }
  0x1a   :  { %258 = vsyncadd [#allocation3], 4294967040 }
  0x1b   :  { %259 = dma.done.wait [#allocation6], 512  }
  0x1c   :  { %260 = vsyncadd [#allocation6], 4294966784  ;;  %vm56_vm0 = vcmask 261120   ;;  %v48_v0 = vld [vmem:[#allocation5 + $0x18] sm:$0xff]  ;;  %v47_v1 = vld [vmem:[#allocation5 + $0x10] sm:$0xff]  ;;  %s267_s24 = smov [#allocation7]  }
  0x1d   :  { %177 = vmatprep.subr.mxu0 %v48_v0  ;;  %v43_v2 = vld [vmem:[#allocation2] sm:$0xff]  ;;  %v46_v3 = vld [vmem:[#allocation5 + $0x8] sm:$0xff]  ;;  %v45_v4 = vld [vmem:[#allocation5] sm:$0xff]  ;;  %s155_s25 = sshll.u32 %s267_s24, 4  ;;  %s156_s25 = int_to_ptr.vmem [resolvable:$true] %s155_s25 }
  0x1e   :  { %178 = vmatpush3.msra.mxu0 %v48_v0  ;;  %185 = vmatprep.mubr.msk.f32.mxu0 %vm56_vm0, %v43_v2  ;;  %v44_v5 = vld [vmem:[#allocation2 + $0x8] sm:$0xff]  ;;  %v168_v7 = vld [vmem:[%s313_s2] ss:$0 sm:$0xff]  ;;  %s237_s2 = scalar_lea.vmem %s156_s25, 256  ;;  %p242_p11 = scmp.lt.s32.totalorder %s156_s25, %s156_s25 }
  0x1f   :  { %179 = vmatprep.subr.mxu0 %v47_v1  ;;  %p238_p10 = scmp.ne.s32.totalorder %s156_s25, %s237_s2  ;;  %p243_p12 = scmp.lt.s32.totalorder %s237_s2, %s237_s2 }
  0x20   :  { %180 = vmatpush3.msra.mxu0 %v47_v1 }
  0x21   :  { %181 = vmatprep.subr.mxu0 %v46_v3  ;;  %p244_p13 = por %p243_p12, %p242_p11 }
  0x22   :  { %182 = vmatpush3.msra.mxu0 %v46_v3 }
  0x23   :  { %183 = vmatprep.subr.mxu0 %v45_v4  ;;  %p245_p0 = pnand %p244_p13, %p238_p10 }
  0x24   :  { %184 = vmatpush3.msra.mxu0 %v45_v4 }
  0x25   :  { %186 = vmatmul.mubr.msk.f32.vlgmr.msra.gmra.mxu0 %vm56_vm0, %v44_v5 }
  0xe5   :  { %v187_v6 = vpop.f32.mrf.mxu0 }
  0xe6   :  { %v135_v10 = vadd.f32 %v187_v6, %v168_v7 }
  0xe7   :  { %v129_v8 = vpop.f32.mrf.mxu0 }
  0xe8   :  { %v130_v9 = vadd.f32 %v168_v7, %v129_v8  ;;  %v139_v12 = vmul.f32 %v135_v10, %v135_v10 }
  0xea   :  { %v138_v11 = vmul.f32 %v130_v9, %v130_v9 }
  0xec   :  { %140 = vadd.xlane.f32.xlu0 %v138_v11 }
  0xf0   :  { %142 = vadd.xlane.f32.xlu0 %v139_v12 }
 0x175   :  { %v141_v13 = vpop.xlane.xlu0 %140 }
 0x176   :  { %193 = vrsqrt.f32 %v141_v13 }
 0x179   :  { %v143_v14 = vpop.xlane.xlu0 %142 }
 0x17a   :  { %195 = vrsqrt.f32 %v143_v14 }
 0x183   :  { %v194_v15 = vpop.eup %193 }
 0x184   :  { %v146_v16 = vmul.f32 %v194_v15, %v130_v9 }
 0x186   :  { %148 = vst [vmem:[#allocation7] sm:$0xff] %v146_v16 }
 0x187   :  { %v196_v17 = vpop.eup %195 }
 0x188   :  { %v147_v18 = vmul.f32 %v196_v17, %v135_v10 }
 0x18a   :  { %149 = vst [vmem:[#allocation7 + $0x8] sm:$0xff] %v147_v18 }
 0x18b   :  { %248 = shalt.err (!%p245_p0)
}
 0x18c   :  { %161 = dma.vmem_to_hbm [thread:$0]  %s156_s25, 256, %s314_s3, [#allocation4], %s264_s15, %s264_s15, %s265_s16  }
 0x18d   :  { %261 = dma.done.wait [#allocation4], 256  }
 0x18e   :  { %262 = vsyncadd [#allocation4], 4294967040 }
 0x18f   :  { %165 = vsyncpa [#allocation3], 1 }
 0x190   :  { %166 = vsyncpa [#allocation6], 1 }
 0x191   :  { %167 = vsyncpa [#allocation4], 1 }

</bundles_post_ra>
